<compile_context>
chip_gen: v5e
topology: v5e:2x2
jax: 0.10.0
libtpu: 0.0.40
codegen_flags: <defaults>
</compile_context>

<pallas_src>
import functools

import jax
import jax.numpy as jnp
from jax.experimental import pallas as pl
from jax.experimental.pallas import tpu as pltpu


# ----------------------------- Pallas kernels ------------------------------

def _apply_act(x, act):
    if act == "none":
        return x
    if act == "leaky":
        return jnp.where(x >= 0, x, 0.2 * x)
    if act == "swish":
        return x * jax.nn.sigmoid(x)
    if act == "sigmoid":
        return jax.nn.sigmoid(x)
    if act == "tanh":
        return jnp.tanh(x)
    raise ValueError(f"unknown act {act}")


def _matmul_act_kernel(a_ref, b_ref, o_ref, *, act):
    acc = jnp.dot(a_ref[...], b_ref[...], preferred_element_type=jnp.float32)
    o_ref[...] = _apply_act(acc, act)


def _gate_kernel(a_ref, b_ref, o_ref):
    # GLU gating: a * sigmoid(b)
    o_ref[...] = a_ref[...] * jax.nn.sigmoid(b_ref[...])


def _row_block(m, k, budget_bytes=4 * 1024 * 1024):
    """Largest row tile that divides m, is a multiple of 8 (512 * 2^j, capped at
    8192) and keeps the f32 LHS block under `budget_bytes`."""
    if m <= 512 or (m % 512) != 0:
        return m
    bm = 512
    while (bm * 2) <= min(m, 8192) and m % (bm * 2) == 0 \
            and (bm * 2) * k * 4 <= budget_bytes:
        bm *= 2
    return bm


_MATMUL_CACHE = {}


def matmul_act(a, b, act="none"):
    """act(A @ B) on the MXU.  A: (M, K), B: (K, N), f32."""
    m0, k = a.shape
    n = b.shape[1]
    m = ((m0 + 7) // 8) * 8          # pad tiny row counts to a sublane multiple
    if m != m0:
        a = jnp.pad(a, ((0, m - m0), (0, 0)))
    key = (m, k, n, act)
    fn = _MATMUL_CACHE.get(key)
    if fn is None:
        bm = _row_block(m, k)
        fn = jax.jit(pl.pallas_call(
            functools.partial(_matmul_act_kernel, act=act),
            out_shape=jax.ShapeDtypeStruct((m, n), jnp.float32),
            grid=(m // bm,),
            in_specs=[
                pl.BlockSpec((bm, k), lambda i: (i, 0)),
                pl.BlockSpec((k, n), lambda i: (0, 0)),
            ],
            out_specs=pl.BlockSpec((bm, n), lambda i: (i, 0)),
            compiler_params=pltpu.CompilerParams(
                dimension_semantics=("parallel",)),
        ))
        _MATMUL_CACHE[key] = fn
    out = fn(a, b)
    return out[:m0] if m != m0 else out


_GATE_CACHE = {}


def gate_mul_sigmoid(a, b):
    """a * sigmoid(b), both (M, C) f32 (GLU gating)."""
    m, c = a.shape
    key = (m, c)
    fn = _GATE_CACHE.get(key)
    if fn is None:
        bm = _row_block(m, c)
        fn = jax.jit(pl.pallas_call(
            _gate_kernel,
            out_shape=jax.ShapeDtypeStruct((m, c), jnp.float32),
            grid=(m // bm,),
            in_specs=[
                pl.BlockSpec((bm, c), lambda i: (i, 0)),
                pl.BlockSpec((bm, c), lambda i: (i, 0)),
            ],
            out_specs=pl.BlockSpec((bm, c), lambda i: (i, 0)),
            compiler_params=pltpu.CompilerParams(
                dimension_semantics=("parallel",)),
        ))
        _GATE_CACHE[key] = fn
    return fn(a, b)


# ----------------------- conv = im2col + Pallas matmul ----------------------

def _im2col(x, kh, kw, stride, pad):
    b, c, h, w = x.shape
    xp = jnp.pad(x, ((0, 0), (0, 0), (pad, pad), (pad, pad)))
    ho = (h + 2 * pad - kh) // stride + 1
    wo = (w + 2 * pad - kw) // stride + 1
    cols = []
    for di in range(kh):
        for dj in range(kw):
            cols.append(
                xp[:, :, di:di + stride * ho:stride, dj:dj + stride * wo:stride])
    p = jnp.stack(cols, axis=0).reshape(kh, kw, b, c, ho, wo)
    p = p.transpose(2, 4, 5, 3, 0, 1).reshape(b * ho * wo, c * kh * kw)
    return p, ho, wo


def conv2d_pallas(x, w, stride, pad, act="none"):
    """PyTorch-style NCHW/OIHW conv (cross-correlation, bias=False) on the MXU."""
    o, _, kh, kw = w.shape
    b = x.shape[0]
    patches, ho, wo = _im2col(x, kh, kw, stride, pad)
    wmat = w.reshape(o, -1).T
    y = matmul_act(patches, wmat, act=act)
    return y.reshape(b, ho, wo, o).transpose(0, 3, 1, 2)


def glu_channels(x):
    """GLU over the channel axis of NCHW (first half * sigmoid(second half))."""
    b, c2, h, w = x.shape
    c = c2 // 2
    a = x[:, :c].transpose(0, 2, 3, 1).reshape(b * h * w, c)
    g = x[:, c:].transpose(0, 2, 3, 1).reshape(b * h * w, c)
    y = gate_mul_sigmoid(a, g)
    return y.reshape(b, h, w, c).transpose(0, 3, 1, 2)


# ------------------------------- JAX glue ----------------------------------

def leaky_relu(x):
    return jnp.where(x >= 0, x, 0.2 * x)


def batch_norm(x, p, eps=1e-5):
    # Training-mode BatchNorm2d (batch statistics), affine gamma/beta.
    mean = jnp.mean(x, axis=(0, 2, 3), keepdims=True)
    var = jnp.var(x, axis=(0, 2, 3), keepdims=True)
    g = p["gamma"].reshape(1, -1, 1, 1)
    b = p["beta"].reshape(1, -1, 1, 1)
    return (x - mean) * jax.lax.rsqrt(var + eps) * g + b


def spectral_normalize(w, u, n_iter=1):
    o = w.shape[0]
    wm = w.reshape(o, -1)

    def l2n(v):
        return v / (jnp.linalg.norm(v) + 1e-12)

    v = None
    for _ in range(n_iter):
        v = l2n(wm.T @ u)
        u = l2n(wm @ v)
    sigma = u @ (wm @ v)
    return w / sigma


def sn_conv(p, x, stride, pad, act="none"):
    w = spectral_normalize(p["w"], p["u"])
    return conv2d_pallas(x, w, stride, pad, act=act)


def avg_pool_2x2(x):
    b, c, h, w = x.shape
    return x.reshape(b, c, h // 2, 2, w // 2, 2).mean(axis=(3, 5))


def adaptive_avg_pool(x, out):
    b, c, h, w = x.shape
    return x.reshape(b, c, out, h // out, out, w // out).mean(axis=(3, 5))


def upsample_nearest_2x(x):
    return jnp.repeat(jnp.repeat(x, 2, axis=2), 2, axis=3)


def resize_nearest(x, size):
    b, c, h, w = x.shape
    ri = jnp.floor(jnp.arange(size) * (h / size)).astype(jnp.int32)
    ci = jnp.floor(jnp.arange(size) * (w / size)).astype(jnp.int32)
    return x[:, :, ri][:, :, :, ci]


def condition_encode(tables, attr_num, y, cond_dim):
    outs = []
    for i, tab in enumerate(tables):
        idx = jnp.where(y[:, i] == -1, attr_num[i], y[:, i])
        outs.append(jnp.take(tab, idx, axis=0))
    e = jnp.concatenate(outs, axis=1)
    return e.reshape(y.shape[0], -1, cond_dim, cond_dim)


# ------------------------------ model blocks --------------------------------

def down_block_comp(p, x):
    m = sn_conv(p["c1"], x, 2, 1)
    m = leaky_relu(batch_norm(m, p["bn1"]))
    m = sn_conv(p["c2"], m, 1, 1)
    m = leaky_relu(batch_norm(m, p["bn2"]))
    d = avg_pool_2x2(x)
    d = sn_conv(p["c3"], d, 1, 0)
    d = leaky_relu(batch_norm(d, p["bn3"]))
    return (m + d) * 0.5


def down_block(p, x):
    y = sn_conv(p["c1"], x, 2, 1)
    return leaky_relu(batch_norm(y, p["bn1"]))


def se_block(p, feat_small, feat_big):
    s = adaptive_avg_pool(feat_small, 4)
    s = sn_conv(p["c1"], s, 1, 0, act="swish")    # 4x4 -> 1x1, Swish fused
    s = sn_conv(p["c2"], s, 1, 0, act="sigmoid")  # 1x1, Sigmoid fused
    return feat_big * s                           # (B, C, 1, 1) broadcast


def simple_decoder(p, x):
    y = adaptive_avg_pool(x, 8)
    for up in p["ups"]:
        y = upsample_nearest_2x(y)
        y = sn_conv(up["c"], y, 1, 1)
        y = batch_norm(y, up["bn"])
        y = glu_channels(y)
    return sn_conv(p["cout"], y, 1, 1, act="tanh")


# ------------------------------ parameters ----------------------------------

class _Keys:
    def __init__(self, key):
        self._key = key

    def __call__(self):
        self._key, sub = jax.random.split(self._key)
        return sub


def _conv_p(kg, c_in, c_out, k):
    fan_in = c_in * k * k
    w = jax.random.normal(kg(), (c_out, c_in, k, k), jnp.float32) / jnp.sqrt(fan_in)
    u = jax.random.normal(kg(), (c_out,), jnp.float32)
    return {"w": w, "u": u}


def _bn_p(c):
    return {"gamma": jnp.ones((c,), jnp.float32),
            "beta": jnp.zeros((c,), jnp.float32)}


def _dbc_p(kg, c_in, c_out):
    return {"c1": _conv_p(kg, c_in, c_out, 4), "bn1": _bn_p(c_out),
            "c2": _conv_p(kg, c_out, c_out, 3), "bn2": _bn_p(c_out),
            "c3": _conv_p(kg, c_in, c_out, 1), "bn3": _bn_p(c_out)}


def _db_p(kg, c_in, c_out):
    return {"c1": _conv_p(kg, c_in, c_out, 4), "bn1": _bn_p(c_out)}


def _se_p(kg, c_in, c_out):
    return {"c1": _conv_p(kg, c_in, c_out, 4), "c2": _conv_p(kg, c_out, c_out, 1)}


def _decoder_p(kg, nfc_in, nc):
    mult = {4: 16, 8: 8, 16: 4, 32: 2, 64: 2, 128: 1, 256: 0.5, 512: 0.25, 1024: 0.125}
    nfc = {k: int(v * 32) for k, v in mult.items()}
    chans = [(nfc_in, nfc[16]), (nfc[16], nfc[32]),
             (nfc[32], nfc[64]), (nfc[64], nfc[128])]
    ups = [{"c": _conv_p(kg, ci, co * 2, 3), "bn": _bn_p(co * 2)} for ci, co in chans]
    return {"ups": ups, "cout": _conv_p(kg, nfc[128], nc, 3)}


def _embed_p(kg, attr_num, emb_dim):
    return [jax.random.normal(kg(), (a + 1, emb_dim), jnp.float32) for a in attr_num]


def init_discriminator(key, ndf=8, nc=3, im_size=256, attr_num=(2, 3)):
    assert im_size == 256, "demo instantiates the im_size=256 branch"
    kg = _Keys(key)
    natt = len(attr_num)
    mult = {4: 16, 8: 16, 16: 8, 32: 4, 64: 2, 128: 1, 256: 0.5, 512: 0.25, 1024: 0.125}
    nfc = {k: int(v * ndf) for k, v in mult.items()}

    p = {"attr_num": tuple(attr_num), "nc": nc, "im_size": im_size}
    p["down_from_big"] = _conv_p(kg, nc, nfc[512], 3)

    p["cond_2"] = (_embed_p(kg, attr_num, 256 ** 2), 256)
    p["cond_4"] = (_embed_p(kg, attr_num, 128 ** 2 * 2), 128)
    p["cond_8"] = (_embed_p(kg, attr_num, 64 ** 2 * 4), 64)
    p["cond_16"] = (_embed_p(kg, attr_num, 32 ** 2 * 8), 32)
    p["cond_32"] = (_embed_p(kg, attr_num, 16 ** 2 * 16), 16)
    p["cond_64"] = (_embed_p(kg, attr_num, 8 ** 2 * 32), 8)

    p["down_4"] = _dbc_p(kg, nfc[512] + natt, nfc[256])
    p["down_8"] = _dbc_p(kg, nfc[256] + 2 * natt, nfc[128])
    p["down_16"] = _dbc_p(kg, nfc[128] + 4 * natt, nfc[64])
    p["down_32"] = _dbc_p(kg, nfc[64] + 8 * natt, nfc[32])
    p["down_64"] = _dbc_p(kg, nfc[32] + 16 * natt, nfc[16])

    p["rf_big"] = {"c1": _conv_p(kg, nfc[16] + 32 * natt, nfc[8], 1),
                   "bn1": _bn_p(nfc[8]),
                   "c2": _conv_p(kg, nfc[8], 1, 4)}

    p["se_2_16"] = _se_p(kg, nfc[512] + natt, nfc[64] + 8 * natt)
    p["se_4_32"] = _se_p(kg, nfc[256] + 2 * natt, nfc[32] + 16 * natt)
    p["se_8_64"] = _se_p(kg, nfc[128] + 4 * natt, nfc[16] + 32 * natt)

    p["down_from_small"] = _conv_p(kg, nc, nfc[256], 4)
    p["cond_4s"] = (_embed_p(kg, attr_num, 64 ** 2 * 2), 64)
    p["cond_8s"] = (_embed_p(kg, attr_num, 32 ** 2 * 4), 32)
    p["cond_16s"] = (_embed_p(kg, attr_num, 16 ** 2 * 8), 16)
    p["cond_32s"] = (_embed_p(kg, attr_num, 8 ** 2 * 16), 8)
    p["down_8s"] = _db_p(kg, nfc[256] + 2 * natt, nfc[128])
    p["down_16s"] = _db_p(kg, nfc[128] + 4 * natt, nfc[64])
    p["down_32s"] = _db_p(kg, nfc[64] + 8 * natt, nfc[32])
    p["rf_small"] = _conv_p(kg, nfc[32] + 16 * natt, 1, 4)

    p["decoder_big"] = _decoder_p(kg, nfc[16] + 32 * natt, nc)
    p["decoder_small"] = _decoder_p(kg, nfc[32] + 16 * natt, nc)
    p["decoder_part"] = _decoder_p(kg, nfc[32] + 16 * natt, nc)
    return p


# -------------------------------- forward -----------------------------------

def discriminator_forward(p, imgs, y, label="real", part=0):
    attr_num = p["attr_num"]
    imgs_big = resize_nearest(imgs, p["im_size"])
    imgs_small = resize_nearest(imgs, 128)

    def cond(name):
        tabs, cd = p[name]
        return condition_encode(tabs, attr_num, y, cd)

    feat_2 = sn_conv(p["down_from_big"], imgs_big, 1, 1, act="leaky")
    feat_2 = jnp.concatenate([feat_2, cond("cond_2")], axis=1)
    feat_4 = down_block_comp(p["down_4"], feat_2)
    feat_4 = jnp.concatenate([feat_4, cond("cond_4")], axis=1)
    feat_8 = down_block_comp(p["down_8"], feat_4)
    feat_8 = jnp.concatenate([feat_8, cond("cond_8")], axis=1)
    feat_16 = down_block_comp(p["down_16"], feat_8)
    feat_16 = jnp.concatenate([feat_16, cond("cond_16")], axis=1)
    feat_16 = se_block(p["se_2_16"], feat_2, feat_16)
    feat_32 = down_block_comp(p["down_32"], feat_16)
    feat_32 = jnp.concatenate([feat_32, cond("cond_32")], axis=1)
    feat_32 = se_block(p["se_4_32"], feat_4, feat_32)
    feat_last = down_block_comp(p["down_64"], feat_32)
    feat_last = jnp.concatenate([feat_last, cond("cond_64")], axis=1)
    feat_last = se_block(p["se_8_64"], feat_8, feat_last)

    r = sn_conv(p["rf_big"]["c1"], feat_last, 1, 0)
    r = leaky_relu(batch_norm(r, p["rf_big"]["bn1"]))
    rf_0 = sn_conv(p["rf_big"]["c2"], r, 1, 0).reshape(-1)

    feat_4s = sn_conv(p["down_from_small"], imgs_small, 2, 1, act="leaky")
    feat_4s = jnp.concatenate([feat_4s, cond("cond_4s")], axis=1)
    feat_8s = down_block(p["down_8s"], feat_4s)
    feat_8s = jnp.concatenate([feat_8s, cond("cond_8s")], axis=1)
    feat_16s = down_block(p["down_16s"], feat_8s)
    feat_16s = jnp.concatenate([feat_16s, cond("cond_16s")], axis=1)
    feat_small = down_block(p["down_32s"], feat_16s)
    feat_small = jnp.concatenate([feat_small, cond("cond_32s")], axis=1)
    rf_1 = sn_conv(p["rf_small"], feat_small, 1, 0).reshape(-1)

    rf = jnp.concatenate([rf_0, rf_1])

    if label == "real":
        rec_big = simple_decoder(p["decoder_big"], feat_last)
        rec_small = simple_decoder(p["decoder_small"], feat_small)
        if part == 0:
            crop = feat_32[:, :, :8, :8]
        elif part == 1:
            crop = feat_32[:, :, :8, 8:]
        elif part == 2:
            crop = feat_32[:, :, 8:, :8]
        else:
            crop = feat_32[:, :, 8:, 8:]
        rec_part = simple_decoder(p["decoder_part"], crop)
        return rf, [rec_big, rec_small, rec_part]
    return rf


# --------------------------------- main --------------------------------------

if __name__ == "__main__":
    root = jax.random.PRNGKey(0)
    k_params, k_img, k_cx, k_cw, k_g1, k_g2 = jax.random.split(root, 6)

    # --- unit checks of the Pallas kernels against plain JAX ---
    xc = jax.random.normal(k_cx, (2, 3, 16, 16), jnp.float32)
    wc = jax.random.normal(k_cw, (4, 3, 4, 4), jnp.float32) * 0.1
    ours = conv2d_pallas(xc, wc, stride=2, pad=1)
    ref = jax.lax.conv_general_dilated(
        xc, wc, window_strides=(2, 2), padding=((1, 1), (1, 1)),
        dimension_numbers=("NCHW", "OIHW", "NCHW"))
    assert jnp.allclose(ours, ref, atol=5e-2, rtol=5e-2), "conv kernel mismatch"

    a = jax.random.normal(k_g1, (512, 64), jnp.float32)
    g = jax.random.normal(k_g2, (512, 64), jnp.float32)
    assert jnp.allclose(gate_mul_sigmoid(a, g), a * jax.nn.sigmoid(g),
                        atol=1e-5, rtol=1e-5), "gate kernel mismatch"

    # --- full Discriminator_v2 forward ---
    B, NC, IM, ATTRS = 2, 3, 256, (2, 3)
    params = init_discriminator(k_params, ndf=8, nc=NC, im_size=IM, attr_num=ATTRS)
    imgs = jax.random.normal(k_img, (B, NC, IM, IM), jnp.float32)
    y = jnp.array([[0, 2], [-1, 1]], dtype=jnp.int32)  # -1 hits the "unknown" row

    rf, recs = discriminator_forward(params, imgs, y, label="real", part=0)
    rf = jax.block_until_ready(rf)
    recs = [jax.block_until_ready(r) for r in recs]

    assert rf.shape == (2 * B * 5 * 5,)
    assert all(r.shape == (B, NC, 128, 128) for r in recs)
    assert bool(jnp.isfinite(rf).all())
    assert all(bool(jnp.isfinite(r).all()) for r in recs)

    rf_fake = jax.block_until_ready(
        discriminator_forward(params, imgs, y, label="fake"))
    assert rf_fake.shape == rf.shape

    print("KERNEL_OK")
</pallas_src>

<mosaic_0001>
module attributes {stable_mosaic.version = 11 : i64} {
  func.func @_matmul_act_kernel(%arg0: i32, %arg1: memref<128x48xf32, #tpu.memory_space<vmem>>, %arg2: memref<48x4xf32, #tpu.memory_space<vmem>>, %arg3: memref<128x4xf32, #tpu.memory_space<vmem>>) attributes {dimension_semantics = [#tpu.dimension_semantics<parallel>], iteration_bounds = array<i64: 1>, scalar_prefetch = 0 : i64, scratch_operands = 0 : i64, tpu.core_type = #tpu.core_type<tc>, window_params = [{transform_indices = @transform_0, window_bounds = array<i64: 128, 48>}, {pipeline_mode = #tpu.pipeline_mode<synchronous>, transform_indices = @transform_1, window_bounds = array<i64: 48, 4>}, {transform_indices = @transform_2, window_bounds = array<i64: 128, 4>}]} {
    %c0 = arith.constant 0 : index
    %c0_0 = arith.constant 0 : index
    %0 = vector.load %arg1[%c0, %c0_0] : memref<128x48xf32, #tpu.memory_space<vmem>>, vector<128x48xf32>
    %c0_1 = arith.constant 0 : index
    %c0_2 = arith.constant 0 : index
    %1 = vector.load %arg2[%c0_1, %c0_2] : memref<48x4xf32, #tpu.memory_space<vmem>>, vector<48x4xf32>
    %cst = arith.constant dense<0.000000e+00> : vector<128x4xf32>
    %2 = tpu.matmul %0, %1, %cst {dimension_numbers = #tpu.dot_dimension_numbers<[1], [0], [0], [1], [0, 0, 1, 1], [], []>} : vector<128x48xf32>, vector<48x4xf32>, vector<128x4xf32> -> vector<128x4xf32>
    %c0_3 = arith.constant 0 : index
    %c0_4 = arith.constant 0 : index
    %3 = vector.load %arg3[%c0_3, %c0_4] : memref<128x4xf32, #tpu.memory_space<vmem>>, vector<128x4xf32>
    tpu.vector_store %arg3[%c0_3, %c0_4], %2 {strides = array<i32>} : memref<128x4xf32, #tpu.memory_space<vmem>>, vector<128x4xf32>,
    return
  }
  func.func @transform_0(%arg0: i32) -> (i32, i32) {
    %c0_i32 = arith.constant 0 : i32
    %c0_i32_0 = arith.constant 0 : i32
    return %arg0, %c0_i32 : i32, i32
  }
  func.func @transform_1(%arg0: i32) -> (i32, i32) {
    %c0_i32 = arith.constant 0 : i32
    %c0_i32_0 = arith.constant 0 : i32
    %c0_i32_1 = arith.constant 0 : i32
    return %c0_i32, %c0_i32_0 : i32, i32
  }
  func.func @transform_2(%arg0: i32) -> (i32, i32) {
    %c0_i32 = arith.constant 0 : i32
    %c0_i32_0 = arith.constant 0 : i32
    return %arg0, %c0_i32 : i32, i32
  }
}

</mosaic_0001>

<bundles_post_ra>
// kernel: tpu_custom_call.1
= control target key start
LH: loop header
LB: loop body
LE: loop exit
PB: predicated region body
PF: predicated region fallthrough
CT: control target
= control target key end

     0   :  { %vm33_vm0 = vcmask 392192   ;;  %vm147_vm1 = vcmask 31744   ;;  %s363_s1 = inlined_call_operand.vmem [shape: f32[48,4], index: 1, kind: input, shape index: {}]   ;;  %s364_s0 = inlined_call_operand.vmem [shape: f32[128,48], index: 0, kind: input, shape index: {}]   ;;  %s365_s2 = inlined_call_operand.vmem [shape: f32[128,4], index: 2, kind: output, shape index: {}]  }
   0x1   :  { %v32_v0 = vld [vmem:[%s363_s1 + $0x28] sm:$0xff]  ;;  %v31_v1 = vld [vmem:[%s363_s1 + $0x20] sm:$0xff]  ;;  %v30_v2 = vld [vmem:[%s363_s1 + $0x18] sm:$0xff] }
   0x2   :  { %185 = vmatpush.msra.mxu2 %v32_v0  ;;  %186 = vmatpush.msra.mxu3 %v32_v0  ;;  %v29_v3 = vld [vmem:[%s363_s1 + $0x10] sm:$0xff]  ;;  %v28_v4 = vld [vmem:[%s363_s1 + $0x8] sm:$0xff]  ;;  %v27_v5 = vld [vmem:[%s363_s1] sm:$0xff] }
   0x3   :  { %92 = vmatpush.msra.mxu0 %v32_v0  ;;  %184 = vmatpush.msra.mxu1 %v32_v0  ;;  %v19_v6 = vld [vmem:[%s364_s0 + $0x40] sm:$0xff]  ;;  %v20_v10 = vld [vmem:[%s364_s0 + $0x48] sm:$0xff]  ;;  %v21_v14 = vld [vmem:[%s364_s0 + $0x50] sm:$0xff] }
   0x4   :  { %188 = vmatpush.msra.mxu2 %v31_v1  ;;  %189 = vmatpush.msra.mxu3 %v31_v1  ;;  %v23_v7 = vld [vmem:[%s364_s0 + $0x60] sm:$0xff]  ;;  %v24_v11 = vld [vmem:[%s364_s0 + $0x68] sm:$0xff]  ;;  %v25_v15 = vld [vmem:[%s364_s0 + $0x70] sm:$0xff] }
   0x5   :  { %93 = vmatpush.msra.mxu0 %v31_v1  ;;  %187 = vmatpush.msra.mxu1 %v31_v1  ;;  %v11_v8 = vld [vmem:[%s364_s0] sm:$0xff]  ;;  %v12_v12 = vld [vmem:[%s364_s0 + $0x8] sm:$0xff]  ;;  %v13_v16 = vld [vmem:[%s364_s0 + $0x10] sm:$0xff] }
   0x6   :  { %191 = vmatpush.msra.mxu2 %v30_v2  ;;  %192 = vmatpush.msra.mxu3 %v30_v2  ;;  %v15_v9 = vld [vmem:[%s364_s0 + $0x20] sm:$0xff]  ;;  %v16_v13 = vld [vmem:[%s364_s0 + $0x28] sm:$0xff]  ;;  %v17_v17 = vld [vmem:[%s364_s0 + $0x30] sm:$0xff] }
   0x7   :  { %94 = vmatpush.msra.mxu0 %v30_v2  ;;  %190 = vmatpush.msra.mxu1 %v30_v2  ;;  %v22_v18 = vld [vmem:[%s364_s0 + $0x58] sm:$0xff] }
   0x8   :  { %194 = vmatpush.msra.mxu2 %v29_v3  ;;  %195 = vmatpush.msra.mxu3 %v29_v3  ;;  %v26_v19 = vld [vmem:[%s364_s0 + $0x78] sm:$0xff] }
   0x9   :  { %95 = vmatpush.msra.mxu0 %v29_v3  ;;  %193 = vmatpush.msra.mxu1 %v29_v3  ;;  %v14_v20 = vld [vmem:[%s364_s0 + $0x18] sm:$0xff] }
   0xa   :  { %197 = vmatpush.msra.mxu2 %v28_v4  ;;  %198 = vmatpush.msra.mxu3 %v28_v4  ;;  %v18_v21 = vld [vmem:[%s364_s0 + $0x38] sm:$0xff] }
   0xb   :  { %96 = vmatpush.msra.mxu0 %v28_v4  ;;  %196 = vmatpush.msra.mxu1 %v28_v4 }
   0xc   :  { %200 = vmatpush.msra.mxu2 %v27_v5  ;;  %201 = vmatpush.msra.mxu3 %v27_v5 }
   0xd   :  { %176 = vmatmul.msk.f32.vlgmr.msra.gmra.mxu2 %vm33_vm0, %v19_v6  ;;  %180 = vmatmul.msk.f32.vlgmr.msra.gmra.mxu3 %vm33_vm0, %v23_v7 }
   0xe   :  { %97 = vmatpush.msra.mxu0 %v27_v5  ;;  %199 = vmatpush.msra.mxu1 %v27_v5 }
   0xf   :  { %168 = vmatmul.msk.f32.vlgmr.msra.gmra.mxu0 %vm33_vm0, %v11_v8  ;;  %172 = vmatmul.msk.f32.vlgmr.msra.gmra.mxu1 %vm33_vm0, %v15_v9 }
  0x15   :  { %177 = vmatmul.msk.f32.gmra.mxu2 %vm33_vm0, %v20_v10  ;;  %181 = vmatmul.msk.f32.gmra.mxu3 %vm33_vm0, %v24_v11 }
  0x17   :  { %169 = vmatmul.msk.f32.gmra.mxu0 %vm33_vm0, %v12_v12  ;;  %173 = vmatmul.msk.f32.gmra.mxu1 %vm33_vm0, %v16_v13 }
  0x1d   :  { %178 = vmatmul.msk.f32.gmra.mxu2 %vm33_vm0, %v21_v14  ;;  %182 = vmatmul.msk.f32.gmra.mxu3 %vm33_vm0, %v25_v15 }
  0x1f   :  { %170 = vmatmul.msk.f32.gmra.mxu0 %vm33_vm0, %v13_v16  ;;  %174 = vmatmul.msk.f32.gmra.mxu1 %vm33_vm0, %v17_v17 }
  0x25   :  { %179 = vmatmul.msk.f32.gmra.mxu2 %vm33_vm0, %v22_v18  ;;  %183 = vmatmul.msk.f32.gmra.mxu3 %vm33_vm0, %v26_v19 }
  0x27   :  { %171 = vmatmul.msk.f32.gmra.mxu0 %vm33_vm0, %v14_v20  ;;  %175 = vmatmul.msk.f32.gmra.mxu1 %vm33_vm0, %v18_v21 }
  0x8c   :  { %v99_v22 = vpop.f32.mrf.mxu0  ;;  %v111_v23 = vpop.f32.mrf.mxu1 }
  0x8d   :  { %148 = vst.msk [vmem:[%s365_s2] sm:$0xff] %vm147_vm1, %v99_v22 }
  0x8e   :  { %152 = vst.msk [vmem:[%s365_s2 + $0x20] sm:$0xff] %vm147_vm1, %v111_v23 }
  0x90   :  { %v123_v24 = vpop.f32.mrf.mxu2  ;;  %v135_v25 = vpop.f32.mrf.mxu3 }
  0x91   :  { %156 = vst.msk [vmem:[%s365_s2 + $0x40] sm:$0xff] %vm147_vm1, %v123_v24 }
  0x92   :  { %160 = vst.msk [vmem:[%s365_s2 + $0x60] sm:$0xff] %vm147_vm1, %v135_v25 }
  0x94   :  { %v102_v26 = vpop.f32.mrf.mxu0  ;;  %v114_v27 = vpop.f32.mrf.mxu1 }
  0x95   :  { %149 = vst.msk [vmem:[%s365_s2 + $0x8] sm:$0xff] %vm147_vm1, %v102_v26 }
  0x96   :  { %153 = vst.msk [vmem:[%s365_s2 + $0x28] sm:$0xff] %vm147_vm1, %v114_v27 }
  0x98   :  { %v126_v28 = vpop.f32.mrf.mxu2  ;;  %v138_v29 = vpop.f32.mrf.mxu3 }
  0x99   :  { %157 = vst.msk [vmem:[%s365_s2 + $0x48] sm:$0xff] %vm147_vm1, %v126_v28 }
  0x9a   :  { %161 = vst.msk [vmem:[%s365_s2 + $0x68] sm:$0xff] %vm147_vm1, %v138_v29 }
  0x9c   :  { %v105_v30 = vpop.f32.mrf.mxu0  ;;  %v117_v31 = vpop.f32.mrf.mxu1 }
  0x9d   :  { %150 = vst.msk [vmem:[%s365_s2 + $0x10] sm:$0xff] %vm147_vm1, %v105_v30 }
  0x9e   :  { %154 = vst.msk [vmem:[%s365_s2 + $0x30] sm:$0xff] %vm147_vm1, %v117_v31 }
  0xa0   :  { %v129_v32 = vpop.f32.mrf.mxu2  ;;  %v141_v33 = vpop.f32.mrf.mxu3 }
  0xa1   :  { %158 = vst.msk [vmem:[%s365_s2 + $0x50] sm:$0xff] %vm147_vm1, %v129_v32 }
  0xa2   :  { %162 = vst.msk [vmem:[%s365_s2 + $0x70] sm:$0xff] %vm147_vm1, %v141_v33 }
  0xa4   :  { %v108_v34 = vpop.f32.mrf.mxu0  ;;  %v120_v35 = vpop.f32.mrf.mxu1 }
  0xa5   :  { %151 = vst.msk [vmem:[%s365_s2 + $0x18] sm:$0xff] %vm147_vm1, %v108_v34 }
  0xa6   :  { %155 = vst.msk [vmem:[%s365_s2 + $0x38] sm:$0xff] %vm147_vm1, %v120_v35 }
  0xa8   :  { %v132_v36 = vpop.f32.mrf.mxu2  ;;  %v144_v37 = vpop.f32.mrf.mxu3 }
  0xa9   :  { %159 = vst.msk [vmem:[%s365_s2 + $0x58] sm:$0xff] %vm147_vm1, %v132_v36 }
  0xaa   :  { %163 = vst.msk [vmem:[%s365_s2 + $0x78] sm:$0xff] %vm147_vm1, %v144_v37 }

</bundles_post_ra>
